<compile_context>
chip_gen: v5e
topology: v5e:2x2
jax: 0.10.0
libtpu: 0.0.40
codegen_flags: <defaults>
</compile_context>

<pallas_src>
import functools

import jax
import jax.numpy as jnp
from jax.experimental import pallas as pl
from jax.experimental.pallas import tpu as pltpu

_LANE = 128  # padded lane width for all channel dims (in / hidden / out <= 128)


# --------------------------------------------------------------------------- #
# Kernel
# --------------------------------------------------------------------------- #
def _model_kernel(adj_ref, pp_ref, x_ref, wc_ref, wl_ref, b_ref, out_ref):
    """Fused forward pass; all operands live whole in VMEM (tiny graph).

    adj_ref : [N, N]          bf16  row-normalized adjacency A (mean aggr)
    pp_ref  : [2*GP, N]       bf16  rows 0..G-1   = P @ A   (pool-after-conv3)
                                    rows GP..GP+G-1 = P      (mean-pool matrix)
    x_ref   : [N, 128]        bf16  node features, zero-padded lanes
    wc_ref  : [3, 256, 128]   bf16  per-layer fused [W_rel ; W_root] (padded)
    wl_ref  : [3, 128, 128]   bf16  lin1 / lin2 / lin weights (padded)
    b_ref   : [8, 128]        f32   rows 0..5 = b1,b2,b3,bl1,bl2,bl (padded)
    out_ref : [GP, 128]       f32   lane- and sublane-dense output
    """
    gp = out_ref.shape[0]

    adj = adj_ref[...]                   # [N, N]     bf16
    pp = pp_ref[...]                     # [2*GP, N]  bf16
    x = x_ref[...]                       # [N, CP]    bf16
    biases = b_ref[...]                  # [8, CP]    f32

    def graph_conv_relu(h, w_fused, b):
        # PyG GraphConv(aggr='mean'): out_i = W_rel @ mean_{j->i} h_j + W_root @ h_i + b
        agg = jnp.dot(adj, h, preferred_element_type=jnp.float32)        # [N, CP] f32
        z = jnp.concatenate([agg.astype(jnp.bfloat16), h], axis=-1)      # [N, 2*CP]
        out = jnp.dot(z, w_fused, preferred_element_type=jnp.float32) + b
        return jnp.maximum(out, 0.0).astype(jnp.bfloat16)

    h = graph_conv_relu(x, wc_ref[0], biases[0:1, :])
    h = graph_conv_relu(h, wc_ref[1], biases[1:2, :])

    # conv3 (linear, no ReLU) commuted with global_mean_pool:
    #   pooled = (P A h2) @ W_rel3 + (P h2) @ W_root3 + b3
    m = jnp.dot(pp, h, preferred_element_type=jnp.float32)               # [2*GP, CP] f32
    z3 = jnp.concatenate(
        [m[:gp].astype(jnp.bfloat16), m[gp:].astype(jnp.bfloat16)], axis=-1)
    pooled = jnp.dot(z3, wc_ref[2], preferred_element_type=jnp.float32) + biases[2:3, :]

    # F.dropout(training=False) -> identity (eval semantics).
    z1 = jnp.maximum(
        jnp.dot(pooled.astype(jnp.bfloat16), wl_ref[0],
                preferred_element_type=jnp.float32) + biases[3:4, :], 0.0)
    z2 = jnp.maximum(
        jnp.dot(z1.astype(jnp.bfloat16), wl_ref[1],
                preferred_element_type=jnp.float32) + biases[4:5, :], 0.0)
    out_ref[...] = (jnp.dot(z2.astype(jnp.bfloat16), wl_ref[2],
                            preferred_element_type=jnp.float32) + biases[5:6, :])


# --------------------------------------------------------------------------- #
# One-time parameter packing (hoisted out of the per-call path)
# --------------------------------------------------------------------------- #
def pack_params(params, cp=_LANE):
    """Pack/pad the 15 module tensors into 3 kernel buffers. Call ONCE at init."""
    def pack_conv(w_rel, w_root):
        w = jnp.zeros((2 * cp, cp), jnp.float32)
        w = w.at[:w_rel.shape[0], :w_rel.shape[1]].set(w_rel)
        w = w.at[cp:cp + w_root.shape[0], :w_root.shape[1]].set(w_root)
        return w

    def pad_sq(w):
        return jnp.zeros((cp, cp), jnp.float32).at[:w.shape[0], :w.shape[1]].set(w)

    def pad_b(b):
        return jnp.zeros((cp,), jnp.float32).at[:b.shape[-1]].set(b.reshape(-1))

    wconv = jnp.stack([
        pack_conv(params["w1_rel"], params["w1_root"]),
        pack_conv(params["w2_rel"], params["w2_root"]),
        pack_conv(params["w3_rel"], params["w3_root"]),
    ]).astype(jnp.bfloat16)                                              # [3, 2*CP, CP]
    wlin = jnp.stack([
        pad_sq(params["wl1"]), pad_sq(params["wl2"]), pad_sq(params["wl"]),
    ]).astype(jnp.bfloat16)                                              # [3, CP, CP]
    bias = jnp.stack([
        pad_b(params["b1"]), pad_b(params["b2"]), pad_b(params["b3"]),
        pad_b(params["bl1"]), pad_b(params["bl2"]), pad_b(params["bl"]),
        jnp.zeros((cp,), jnp.float32), jnp.zeros((cp,), jnp.float32),    # pad to 8 rows
    ])                                                                   # [8, CP] f32
    return wconv, wlin, bias


# --------------------------------------------------------------------------- #
# Forward wrapper
# --------------------------------------------------------------------------- #
@functools.partial(jax.jit, static_argnames=("num_graphs", "out_channels"))
def model1_forward(x, edge_index, batch, wconv, wlin, bias, *, num_graphs,
                   out_channels):
    """Densify the graph structure, call the fused kernel, slice real outputs."""
    n, in_channels = x.shape
    cp = _LANE
    gp = max(8, ((num_graphs + 7) // 8) * 8)        # pad graph rows to sublane tile

    src, dst = edge_index[0], edge_index[1]
    # Dense mean-aggregation operator: A[i, j] = count(j->i) / in_deg(i)   (f32)
    adj = jnp.zeros((n, n), jnp.float32).at[dst, src].add(1.0)
    adj = adj / jnp.maximum(adj.sum(axis=1, keepdims=True), 1.0)
    # Mean-pooling operator: P[g, n] = 1/|graph g| if batch[n] == g        (f32)
    pool = jnp.zeros((num_graphs, n), jnp.float32).at[batch, jnp.arange(n)].set(1.0)
    pool = pool / jnp.maximum(pool.sum(axis=1, keepdims=True), 1.0)
    # Pool commuted through the (linear) third conv: PA = P @ A
    pa = pool @ adj                                                       # [G, N] f32

    pp = jnp.zeros((2 * gp, n), jnp.float32)
    pp = pp.at[:num_graphs].set(pa).at[gp:gp + num_graphs].set(pool)
    pp = pp.astype(jnp.bfloat16)                                          # [2*GP, N]
    adj = adj.astype(jnp.bfloat16)                                        # [N, N]

    x_pad = jnp.zeros((n, cp), jnp.bfloat16).at[:, :in_channels].set(
        x.astype(jnp.bfloat16))

    args = (adj, pp, x_pad, wconv, wlin, bias)

    in_bytes = sum(int(a.size) * a.dtype.itemsize for a in args)
    out_bytes = gp * cp * 4
    flops = (2 * (2 * n * n * cp + 2 * n * (2 * cp) * cp)     # conv1, conv2
             + 2 * (2 * gp) * n * cp                          # [PA;P] @ h2
             + 2 * gp * (2 * cp) * cp                         # fused conv3 weight
             + 3 * (2 * gp * cp * cp))                        # MLP head
    cost = pl.CostEstimate(flops=flops, transcendentals=0,
                           bytes_accessed=in_bytes + out_bytes)

    vmem = pl.BlockSpec(memory_space=pltpu.MemorySpace.VMEM)
    out = pl.pallas_call(
        _model_kernel,
        out_shape=jax.ShapeDtypeStruct((gp, cp), jnp.float32),
        in_specs=[vmem] * len(args),
        out_specs=vmem,
        cost_estimate=cost,
    )(*args)
    return out[:num_graphs, :out_channels]


# --------------------------------------------------------------------------- #
# Parameters / references
# --------------------------------------------------------------------------- #
def init_params(key, in_channels, hidden, out_channels):
    """Deterministic synthetic parameters. Weights stored as (in, out)."""
    ks = jax.random.split(key, 16)

    def w(k, i, o, scale):
        return jax.random.normal(k, (i, o), jnp.float32) * scale

    return {
        "w1_rel":  w(ks[0], in_channels, hidden, 0.2),
        "w1_root": w(ks[1], in_channels, hidden, 0.2),
        "b1":      w(ks[2], 1, hidden, 0.1),
        "w2_rel":  w(ks[3], hidden, hidden, 0.1),
        "w2_root": w(ks[4], hidden, hidden, 0.1),
        "b2":      w(ks[5], 1, hidden, 0.1),
        "w3_rel":  w(ks[6], hidden, hidden, 0.1),
        "w3_root": w(ks[7], hidden, hidden, 0.1),
        "b3":      w(ks[8], 1, hidden, 0.1),
        "wl1":     w(ks[9], hidden, hidden, 0.1),
        "bl1":     w(ks[10], 1, hidden, 0.1),
        "wl2":     w(ks[11], hidden, hidden, 0.1),
        "bl2":     w(ks[12], 1, hidden, 0.1),
        "wl":      w(ks[13], hidden, out_channels, 0.1),
        "bl":      w(ks[14], 1, out_channels, 0.1),
    }


def _build_ops(x, edge_index, batch, num_graphs):
    n = x.shape[0]
    adj = jnp.zeros((n, n), jnp.float32).at[edge_index[1], edge_index[0]].add(1.0)
    adj = adj / jnp.maximum(adj.sum(1, keepdims=True), 1.0)
    pool = jnp.zeros((num_graphs, n), jnp.float32).at[batch, jnp.arange(n)].set(1.0)
    pool = pool / jnp.maximum(pool.sum(1, keepdims=True), 1.0)
    return adj, pool


def _reference_forward_f32(x, edge_index, batch, params, num_graphs):
    """Pure-JAX f32 reference (module semantics)."""
    adj, pool = _build_ops(x, edge_index, batch, num_graphs)

    def gc(h, wr, ws, b, relu):
        o = adj @ h @ wr + h @ ws + b
        return jnp.maximum(o, 0.0) if relu else o

    h = gc(x, params["w1_rel"], params["w1_root"], params["b1"], True)
    h = gc(h, params["w2_rel"], params["w2_root"], params["b2"], True)
    h = gc(h, params["w3_rel"], params["w3_root"], params["b3"], False)
    g = pool @ h
    g = jnp.maximum(g @ params["wl1"] + params["bl1"], 0.0)
    g = jnp.maximum(g @ params["wl2"] + params["bl2"], 0.0)
    return g @ params["wl"] + params["bl"]


def _reference_forward_matched(x, edge_index, batch, params, num_graphs):
    """Pure-JAX reference mirroring the kernel's numerics (bf16 operands,
    f32 accumulate, pool commuted through the linear conv3)."""
    adj, pool = _build_ops(x, edge_index, batch, num_graphs)
    pa = pool @ adj
    adj_bf = adj.astype(jnp.bfloat16)
    pa_bf = pa.astype(jnp.bfloat16)
    pool_bf = pool.astype(jnp.bfloat16)
    bf = lambda a: a.astype(jnp.bfloat16)
    f32dot = lambda a, b: jnp.dot(a, b, preferred_element_type=jnp.float32)

    def gc_relu(h, wr, ws, b):
        agg = f32dot(adj_bf, h).astype(jnp.bfloat16)
        o = f32dot(agg, bf(wr)) + f32dot(h, bf(ws)) + b
        return jnp.maximum(o, 0.0).astype(jnp.bfloat16)

    h = gc_relu(bf(x), params["w1_rel"], params["w1_root"], params["b1"])
    h = gc_relu(h, params["w2_rel"], params["w2_root"], params["b2"])
    m_top = f32dot(pa_bf, h).astype(jnp.bfloat16)
    m_bot = f32dot(pool_bf, h).astype(jnp.bfloat16)
    g = (f32dot(m_top, bf(params["w3_rel"]))
         + f32dot(m_bot, bf(params["w3_root"])) + params["b3"])
    g = jnp.maximum(f32dot(bf(g), bf(params["wl1"])) + params["bl1"], 0.0)
    g = jnp.maximum(f32dot(bf(g), bf(params["wl2"])) + params["bl2"], 0.0)
    return f32dot(bf(g), bf(params["wl"])) + params["bl"]


# --------------------------------------------------------------------------- #
# Demo / self-test
# --------------------------------------------------------------------------- #
if __name__ == "__main__":
    key = jax.random.PRNGKey(0)
    k_x, k_e, k_p = jax.random.split(key, 3)

    # Small synthetic graph batch: 2 graphs, 16 nodes total, 8 input features,
    # hidden=32, 4 output classes.
    num_nodes = 16
    num_edges = 40
    in_channels = 8
    hidden = 32
    out_channels = 4
    num_graphs = 2

    x = jax.random.normal(k_x, (num_nodes, in_channels), jnp.float32)
    edge_index = jax.random.randint(k_e, (2, num_edges), 0, num_nodes, jnp.int32)
    # nodes 0..7 -> graph 0, nodes 8..15 -> graph 1
    batch = jnp.concatenate([jnp.zeros(8, jnp.int32), jnp.ones(8, jnp.int32)])

    params = init_params(k_p, in_channels, hidden, out_channels)
    # One-time parameter packing (hoisted out of the per-call path).
    wconv, wlin, bias = pack_params(params)

    out = model1_forward(x, edge_index, batch, wconv, wlin, bias,
                         num_graphs=num_graphs, out_channels=out_channels)
    out = jax.block_until_ready(out)
    assert out.shape == (num_graphs, out_channels)

    # 1) kernel vs. a numerically-matched (bf16-in / f32-acc, commuted-pool)
    #    reference: tight.
    ref_m = _reference_forward_matched(x, edge_index, batch, params, num_graphs)
    assert jnp.allclose(out, ref_m, atol=2e-3, rtol=2e-3)

    # 2) kernel vs. full-f32 module semantics: loose (bf16 rounding only).
    ref_f32 = _reference_forward_f32(x, edge_index, batch, params, num_graphs)
    assert jnp.allclose(out, ref_f32, atol=5e-2, rtol=5e-2)

    print("KERNEL_OK")
</pallas_src>

<mosaic_0001>
module attributes {stable_mosaic.version = 11 : i64} {
  func.func @_model_kernel(%arg0: memref<16x16xbf16, #tpu.memory_space<vmem>>, %arg1: memref<16x16xbf16, #tpu.memory_space<vmem>>, %arg2: memref<16x128xbf16, #tpu.memory_space<vmem>>, %arg3: memref<3x256x128xbf16, #tpu.memory_space<vmem>>, %arg4: memref<3x128x128xbf16, #tpu.memory_space<vmem>>, %arg5: memref<8x128xf32, #tpu.memory_space<vmem>>, %arg6: memref<8x128xf32, #tpu.memory_space<vmem>>) attributes {dimension_semantics = [], scalar_prefetch = 0 : i64, scratch_operands = 0 : i64, tpu.core_type = #tpu.core_type<tc>} {
    %c0 = arith.constant 0 : index
    %c0_0 = arith.constant 0 : index
    %0 = vector.load %arg0[%c0, %c0_0] : memref<16x16xbf16, #tpu.memory_space<vmem>>, vector<16x16xbf16>
    %c0_1 = arith.constant 0 : index
    %c0_2 = arith.constant 0 : index
    %1 = vector.load %arg1[%c0_1, %c0_2] : memref<16x16xbf16, #tpu.memory_space<vmem>>, vector<16x16xbf16>
    %c0_3 = arith.constant 0 : index
    %c0_4 = arith.constant 0 : index
    %2 = vector.load %arg2[%c0_3, %c0_4] : memref<16x128xbf16, #tpu.memory_space<vmem>>, vector<16x128xbf16>
    %c0_5 = arith.constant 0 : index
    %c0_6 = arith.constant 0 : index
    %3 = vector.load %arg5[%c0_5, %c0_6] : memref<8x128xf32, #tpu.memory_space<vmem>>, vector<8x128xf32>
    %c0_7 = arith.constant 0 : index
    %c0_8 = arith.constant 0 : index
    %c0_9 = arith.constant 0 : index
    %4 = vector.load %arg3[%c0_7, %c0_8, %c0_9] : memref<3x256x128xbf16, #tpu.memory_space<vmem>>, vector<1x256x128xbf16>
    %5 = vector.shape_cast %4 : vector<1x256x128xbf16> to vector<256x128xbf16>
    %6 = vector.extract_strided_slice %3 {offsets = [0, 0], sizes = [1, 128], strides = [1, 1]} : vector<8x128xf32> to vector<1x128xf32>
    %cst = arith.constant dense<0.000000e+00> : vector<16x128xf32>
    %7 = tpu.matmul %0, %2, %cst {dimension_numbers = #tpu.dot_dimension_numbers<[1], [0], [0], [1], [0, 0, 1, 1], [], []>} : vector<16x16xbf16>, vector<16x128xbf16>, vector<16x128xf32> -> vector<16x128xf32>
    %8 = arith.truncf %7 : vector<16x128xf32> to vector<16x128xbf16>
    %9 = tpu.concatenate %8, %2 in 1 : vector<16x128xbf16>, vector<16x128xbf16> -> vector<16x256xbf16>
    %cst_10 = arith.constant dense<0.000000e+00> : vector<16x128xf32>
    %10 = tpu.matmul %9, %5, %cst_10 {dimension_numbers = #tpu.dot_dimension_numbers<[1], [0], [0], [1], [0, 0, 1, 1], [], []>} : vector<16x256xbf16>, vector<256x128xbf16>, vector<16x128xf32> -> vector<16x128xf32>
    %11 = vector.broadcast %6 : vector<1x128xf32> to vector<16x128xf32>
    %12 = arith.addf %10, %11 : vector<16x128xf32>
    %cst_11 = arith.constant 0.000000e+00 : f32
    %13 = vector.broadcast %cst_11 : f32 to vector<16x128xf32>
    %14 = arith.maximumf %12, %13 : vector<16x128xf32>
    %15 = arith.truncf %14 : vector<16x128xf32> to vector<16x128xbf16>
    %c1 = arith.constant 1 : index
    %c0_12 = arith.constant 0 : index
    %c0_13 = arith.constant 0 : index
    %16 = vector.load %arg3[%c1, %c0_12, %c0_13] : memref<3x256x128xbf16, #tpu.memory_space<vmem>>, vector<1x256x128xbf16>
    %17 = vector.shape_cast %16 : vector<1x256x128xbf16> to vector<256x128xbf16>
    %18 = vector.extract_strided_slice %3 {offsets = [1, 0], sizes = [1, 128], strides = [1, 1]} : vector<8x128xf32> to vector<1x128xf32>
    %cst_14 = arith.constant dense<0.000000e+00> : vector<16x128xf32>
    %19 = tpu.matmul %0, %15, %cst_14 {dimension_numbers = #tpu.dot_dimension_numbers<[1], [0], [0], [1], [0, 0, 1, 1], [], []>} : vector<16x16xbf16>, vector<16x128xbf16>, vector<16x128xf32> -> vector<16x128xf32>
    %20 = arith.truncf %19 : vector<16x128xf32> to vector<16x128xbf16>
    %21 = tpu.concatenate %20, %15 in 1 : vector<16x128xbf16>, vector<16x128xbf16> -> vector<16x256xbf16>
    %cst_15 = arith.constant dense<0.000000e+00> : vector<16x128xf32>
    %22 = tpu.matmul %21, %17, %cst_15 {dimension_numbers = #tpu.dot_dimension_numbers<[1], [0], [0], [1], [0, 0, 1, 1], [], []>} : vector<16x256xbf16>, vector<256x128xbf16>, vector<16x128xf32> -> vector<16x128xf32>
    %23 = vector.broadcast %18 : vector<1x128xf32> to vector<16x128xf32>
    %24 = arith.addf %22, %23 : vector<16x128xf32>
    %cst_16 = arith.constant 0.000000e+00 : f32
    %25 = vector.broadcast %cst_16 : f32 to vector<16x128xf32>
    %26 = arith.maximumf %24, %25 : vector<16x128xf32>
    %27 = arith.truncf %26 : vector<16x128xf32> to vector<16x128xbf16>
    %cst_17 = arith.constant dense<0.000000e+00> : vector<16x128xf32>
    %28 = tpu.matmul %1, %27, %cst_17 {dimension_numbers = #tpu.dot_dimension_numbers<[1], [0], [0], [1], [0, 0, 1, 1], [], []>} : vector<16x16xbf16>, vector<16x128xbf16>, vector<16x128xf32> -> vector<16x128xf32>
    %29 = vector.extract_strided_slice %28 {offsets = [0, 0], sizes = [8, 128], strides = [1, 1]} : vector<16x128xf32> to vector<8x128xf32>
    %30 = arith.truncf %29 : vector<8x128xf32> to vector<8x128xbf16>
    %31 = vector.extract_strided_slice %28 {offsets = [8, 0], sizes = [8, 128], strides = [1, 1]} : vector<16x128xf32> to vector<8x128xf32>
    %32 = arith.truncf %31 : vector<8x128xf32> to vector<8x128xbf16>
    %33 = tpu.concatenate %30, %32 in 1 : vector<8x128xbf16>, vector<8x128xbf16> -> vector<8x256xbf16>
    %c2 = arith.constant 2 : index
    %c0_18 = arith.constant 0 : index
    %c0_19 = arith.constant 0 : index
    %34 = vector.load %arg3[%c2, %c0_18, %c0_19] : memref<3x256x128xbf16, #tpu.memory_space<vmem>>, vector<1x256x128xbf16>
    %35 = vector.shape_cast %34 : vector<1x256x128xbf16> to vector<256x128xbf16>
    %cst_20 = arith.constant dense<0.000000e+00> : vector<8x128xf32>
    %36 = tpu.matmul %33, %35, %cst_20 {dimension_numbers = #tpu.dot_dimension_numbers<[1], [0], [0], [1], [0, 0, 1, 1], [], []>} : vector<8x256xbf16>, vector<256x128xbf16>, vector<8x128xf32> -> vector<8x128xf32>
    %37 = vector.extract_strided_slice %3 {offsets = [2, 0], sizes = [1, 128], strides = [1, 1]} : vector<8x128xf32> to vector<1x128xf32>
    %38 = vector.broadcast %37 : vector<1x128xf32> to vector<8x128xf32>
    %39 = arith.addf %36, %38 : vector<8x128xf32>
    %40 = arith.truncf %39 : vector<8x128xf32> to vector<8x128xbf16>
    %c0_21 = arith.constant 0 : index
    %c0_22 = arith.constant 0 : index
    %c0_23 = arith.constant 0 : index
    %41 = vector.load %arg4[%c0_21, %c0_22, %c0_23] : memref<3x128x128xbf16, #tpu.memory_space<vmem>>, vector<1x128x128xbf16>
    %42 = vector.shape_cast %41 : vector<1x128x128xbf16> to vector<128x128xbf16>
    %cst_24 = arith.constant dense<0.000000e+00> : vector<8x128xf32>
    %43 = tpu.matmul %40, %42, %cst_24 {dimension_numbers = #tpu.dot_dimension_numbers<[1], [0], [0], [1], [0, 0, 1, 1], [], []>} : vector<8x128xbf16>, vector<128x128xbf16>, vector<8x128xf32> -> vector<8x128xf32>
    %44 = vector.extract_strided_slice %3 {offsets = [3, 0], sizes = [1, 128], strides = [1, 1]} : vector<8x128xf32> to vector<1x128xf32>
    %45 = vector.broadcast %44 : vector<1x128xf32> to vector<8x128xf32>
    %46 = arith.addf %43, %45 : vector<8x128xf32>
    %cst_25 = arith.constant 0.000000e+00 : f32
    %47 = vector.broadcast %cst_25 : f32 to vector<8x128xf32>
    %48 = arith.maximumf %46, %47 : vector<8x128xf32>
    %49 = arith.truncf %48 : vector<8x128xf32> to vector<8x128xbf16>
    %c1_26 = arith.constant 1 : index
    %c0_27 = arith.constant 0 : index
    %c0_28 = arith.constant 0 : index
    %50 = vector.load %arg4[%c1_26, %c0_27, %c0_28] : memref<3x128x128xbf16, #tpu.memory_space<vmem>>, vector<1x128x128xbf16>
    %51 = vector.shape_cast %50 : vector<1x128x128xbf16> to vector<128x128xbf16>
    %cst_29 = arith.constant dense<0.000000e+00> : vector<8x128xf32>
    %52 = tpu.matmul %49, %51, %cst_29 {dimension_numbers = #tpu.dot_dimension_numbers<[1], [0], [0], [1], [0, 0, 1, 1], [], []>} : vector<8x128xbf16>, vector<128x128xbf16>, vector<8x128xf32> -> vector<8x128xf32>
    %53 = vector.extract_strided_slice %3 {offsets = [4, 0], sizes = [1, 128], strides = [1, 1]} : vector<8x128xf32> to vector<1x128xf32>
    %54 = vector.broadcast %53 : vector<1x128xf32> to vector<8x128xf32>
    %55 = arith.addf %52, %54 : vector<8x128xf32>
    %cst_30 = arith.constant 0.000000e+00 : f32
    %56 = vector.broadcast %cst_30 : f32 to vector<8x128xf32>
    %57 = arith.maximumf %55, %56 : vector<8x128xf32>
    %58 = arith.truncf %57 : vector<8x128xf32> to vector<8x128xbf16>
    %c2_31 = arith.constant 2 : index
    %c0_32 = arith.constant 0 : index
    %c0_33 = arith.constant 0 : index
    %59 = vector.load %arg4[%c2_31, %c0_32, %c0_33] : memref<3x128x128xbf16, #tpu.memory_space<vmem>>, vector<1x128x128xbf16>
    %60 = vector.shape_cast %59 : vector<1x128x128xbf16> to vector<128x128xbf16>
    %cst_34 = arith.constant dense<0.000000e+00> : vector<8x128xf32>
    %61 = tpu.matmul %58, %60, %cst_34 {dimension_numbers = #tpu.dot_dimension_numbers<[1], [0], [0], [1], [0, 0, 1, 1], [], []>} : vector<8x128xbf16>, vector<128x128xbf16>, vector<8x128xf32> -> vector<8x128xf32>
    %62 = vector.extract_strided_slice %3 {offsets = [5, 0], sizes = [1, 128], strides = [1, 1]} : vector<8x128xf32> to vector<1x128xf32>
    %63 = vector.broadcast %62 : vector<1x128xf32> to vector<8x128xf32>
    %64 = arith.addf %61, %63 : vector<8x128xf32>
    %c0_35 = arith.constant 0 : index
    %c0_36 = arith.constant 0 : index
    %65 = vector.load %arg6[%c0_35, %c0_36] : memref<8x128xf32, #tpu.memory_space<vmem>>, vector<8x128xf32>
    tpu.vector_store %arg6[%c0_35, %c0_36], %64 {strides = array<i32>} : memref<8x128xf32, #tpu.memory_space<vmem>>, vector<8x128xf32>,
    return
  }
}

</mosaic_0001>

<bundles_post_ra>
// kernel: model1_forward.1
= control target key start
LH: loop header
LB: loop body
LE: loop exit
PB: predicated region body
PF: predicated region fallthrough
CT: control target
= control target key end

     0   :  { %vm74_vm0 = vcmask 130048   ;;  %s1599_s2 = inlined_call_operand.vmem [shape: bf16[16,128], index: 2, kind: input, shape index: {}]   ;;  %s1600_s0 = inlined_call_operand.vmem [shape: bf16[16,16], index: 0, kind: input, shape index: {}]   ;;  %s1601_s3 = inlined_call_operand.vmem [shape: bf16[3,256,128], index: 3, kind: input, shape index: {}]   ;;  %s1602_s5 = inlined_call_operand.vmem [shape: f32[8,128], index: 5, kind: input, shape index: {}]   ;;  %s1603_s1 = inlined_call_operand.vmem [shape: bf16[16,16], index: 1, kind: input, shape index: {}]   ;;  %s1604_s4 = inlined_call_operand.vmem [shape: bf16[3,128,128], index: 4, kind: input, shape index: {}]   ;;  %s1605_s6 = inlined_call_operand.vmem [shape: f32[8,128], index: 6, kind: output, shape index: {}]  }
   0x1   :  { %v1245_v0 = vld [vmem:[%s1599_s2] sm:$0xff]  ;;  %v1261_v1 = vld [vmem:[%s1601_s3 + $0x78] sm:$0xff]  ;;  %v1260_v4 = vld [vmem:[%s1601_s3 + $0x70] sm:$0xff] }
   0x2   :  { %v1362_v2 = vld [vmem:[%s1600_s0] sm:$0xff]  ;;  %v1253_v3 = vld [vmem:[%s1601_s3 + $0x38] sm:$0xff]  ;;  %85 = vmatpush.bf16.msra.mxu0 %v1245_v0  ;;  %211 = vmatpush.bf16.msra.mxu2 %v1261_v1  ;;  %v1252_v5 = vld [vmem:[%s1601_s3 + $0x30] sm:$0xff] }
   0x3   :  { %197 = vmatpush.bf16.msra.mxu1 %v1253_v3  ;;  %v1259_v6 = vld [vmem:[%s1601_s3 + $0x68] sm:$0xff]  ;;  %v1258_v8 = vld [vmem:[%s1601_s3 + $0x60] sm:$0xff]  ;;  %v1257_v10 = vld [vmem:[%s1601_s3 + $0x58] sm:$0xff] }
   0x4   :  { %v1251_v7 = vld [vmem:[%s1601_s3 + $0x28] sm:$0xff]  ;;  %v1250_v9 = vld [vmem:[%s1601_s3 + $0x20] sm:$0xff]  ;;  %v1256_v11 = vld [vmem:[%s1601_s3 + $0x50] sm:$0xff] }
   0x5   :  { %852 = vmatmul.msk.bf16.vlgmr.msra.gmra.mxu0 %vm74_vm0, %v1362_v2  ;;  %v1255_v12 = vld [vmem:[%s1601_s3 + $0x48] sm:$0xff]  ;;  %v1249_v13 = vld [vmem:[%s1601_s3 + $0x18] sm:$0xff]  ;;  %v1254_v14 = vld [vmem:[%s1601_s3 + $0x40] sm:$0xff] }
   0x6   :  { %212 = vmatpush.bf16.msra.mxu2 %v1260_v4  ;;  %v1248_v15 = vld [vmem:[%s1601_s3 + $0x10] sm:$0xff]  ;;  %v1247_v16 = vld [vmem:[%s1601_s3 + $0x8] sm:$0xff]  ;;  %v1246_v17 = vld [vmem:[%s1601_s3] sm:$0xff] }
   0x7   :  { %198 = vmatpush.bf16.msra.mxu1 %v1252_v5  ;;  %v1414_v25 = vld [vmem:[%s1602_s5] sm:$0xff]  ;;  %v1277_v41 = vld [vmem:[%s1601_s3 + $0xf8] sm:$0xff]  ;;  %v1276_v44 = vld [vmem:[%s1601_s3 + $0xf0] sm:$0xff] }
   0x8   :  { %v100_v26 = vperm.slane %v1414_v25, 0  ;;  %v1269_v43 = vld [vmem:[%s1601_s3 + $0xb8] sm:$0xff]  ;;  %v1268_v45 = vld [vmem:[%s1601_s3 + $0xb0] sm:$0xff]  ;;  %v1275_v46 = vld [vmem:[%s1601_s3 + $0xe8] sm:$0xff] }
   0x9   :  { %387 = vmatpush.bf16.msrb.mxu0 %v1269_v43  ;;  %v1267_v47 = vld [vmem:[%s1601_s3 + $0xa8] sm:$0xff]  ;;  %v1274_v48 = vld [vmem:[%s1601_s3 + $0xe0] sm:$0xff]  ;;  %v1273_v50 = vld [vmem:[%s1601_s3 + $0xd8] sm:$0xff] }
   0xa   :  { %213 = vmatpush.bf16.msra.mxu2 %v1259_v6  ;;  %v1266_v49 = vld [vmem:[%s1601_s3 + $0xa0] sm:$0xff]  ;;  %v1272_v51 = vld [vmem:[%s1601_s3 + $0xd0] sm:$0xff]  ;;  %v1271_v52 = vld [vmem:[%s1601_s3 + $0xc8] sm:$0xff] }
   0xb   :  { %199 = vmatpush.bf16.msra.mxu1 %v1251_v7  ;;  %v1270_v53 = vld [vmem:[%s1601_s3 + $0xc0] sm:$0xff]  ;;  %v1265_v54 = vld [vmem:[%s1601_s3 + $0x98] sm:$0xff]  ;;  %v1264_v55 = vld [vmem:[%s1601_s3 + $0x90] sm:$0xff] }
   0xc   :  { %v1263_v56 = vld [vmem:[%s1601_s3 + $0x88] sm:$0xff]  ;;  %v1262_v57 = vld [vmem:[%s1601_s3 + $0x80] sm:$0xff]  ;;  %v1285_v1 = vld [vmem:[%s1601_s3 + $0x138] sm:$0xff] }
   0xd   :  { %388 = vmatpush.bf16.msrb.mxu0 %v1268_v45  ;;  %v1284_v3 = vld [vmem:[%s1601_s3 + $0x130] sm:$0xff]  ;;  %v1283_v5 = vld [vmem:[%s1601_s3 + $0x128] sm:$0xff]  ;;  %v1282_v7 = vld [vmem:[%s1601_s3 + $0x120] sm:$0xff] }
   0xe   :  { %214 = vmatpush.bf16.msra.mxu2 %v1258_v8  ;;  %v1292_v4 = vld [vmem:[%s1601_s3 + $0x170] sm:$0xff]  ;;  %v1291_v6 = vld [vmem:[%s1601_s3 + $0x168] sm:$0xff]  ;;  %v1290_v8 = vld [vmem:[%s1601_s3 + $0x160] sm:$0xff] }
   0xf   :  { %200 = vmatpush.bf16.msra.mxu1 %v1250_v9  ;;  %v1309_v43 = vld [vmem:[%s1604_s4 + $0x78] sm:$0xff]  ;;  %v1307_v45 = vld [vmem:[%s1604_s4 + $0x68] sm:$0xff] }
  0x11   :  { %389 = vmatpush.bf16.msrb.mxu0 %v1267_v47  ;;  %v1305_v47 = vld [vmem:[%s1604_s4 + $0x58] sm:$0xff] }
  0x12   :  { %215 = vmatpush.bf16.msra.mxu2 %v1257_v10 }
  0x13   :  { %201 = vmatpush.bf16.msra.mxu1 %v1249_v13  ;;  %v1289_v13 = vld [vmem:[%s1601_s3 + $0x158] sm:$0xff] }
  0x15   :  { %390 = vmatpush.bf16.msrb.mxu0 %v1266_v49  ;;  %v475_v49 = vperm.slane %v1414_v25, 2 }
  0x16   :  { %216 = vmatpush.bf16.msra.mxu2 %v1256_v11  ;;  %v290_v11 = vperm.slane %v1414_v25, 1 }
  0x17   :  { %202 = vmatpush.bf16.msra.mxu1 %v1248_v15  ;;  %v1280_v15 = vld [vmem:[%s1601_s3 + $0x110] sm:$0xff] }
  0x19   :  { %391 = vmatpush.bf16.msrb.mxu0 %v1265_v54 }
  0x1a   :  { %217 = vmatpush.bf16.msra.mxu2 %v1255_v12  ;;  %v1281_v12 = vld [vmem:[%s1601_s3 + $0x118] sm:$0xff] }
  0x1b   :  { %203 = vmatpush.bf16.msra.mxu1 %v1247_v16 }
  0x1d   :  { %392 = vmatpush.bf16.msrb.mxu0 %v1264_v55 }
  0x1e   :  { %218 = vmatpush.bf16.msra.mxu2 %v1254_v14 }
  0x1f   :  { %204 = vmatpush.bf16.msra.mxu1 %v1246_v17 }
  0x21   :  { %219 = vmatmul.bf16.vlgmr.msra.gmra.mxu2 %v1245_v0  ;;  %393 = vmatpush.bf16.msrb.mxu0 %v1263_v56 }
  0x22   :  { %572 = vmatpush.bf16.msrb.mxu2 %v1285_v1  ;;  %v615_v1 = vperm.slane %v1414_v25, 3 }
  0x25   :  { %394 = vmatpush.bf16.msrb.mxu0 %v1262_v57  ;;  %v1303_v57 = vld [vmem:[%s1604_s4 + $0x48] sm:$0xff] }
  0x26   :  { %573 = vmatpush.bf16.msrb.mxu2 %v1284_v3 }
  0x2a   :  { %574 = vmatpush.bf16.msrb.mxu2 %v1283_v5 }
  0x2e   :  { %575 = vmatpush.bf16.msrb.mxu2 %v1282_v7  ;;  %v1311_v7 = vld [vmem:[%s1604_s4 + $0x88] sm:$0xff] }
  0x32   :  { %576 = vmatpush.bf16.msrb.mxu2 %v1281_v12 }
  0x36   :  { %577 = vmatpush.bf16.msrb.mxu2 %v1280_v15  ;;  %v777_v15 = vperm.slane %v1414_v25, 5 }
  0x82   :  { %v87_v18 = vpop.f32.mrf.mxu0 }
  0x83   :  { %v92_v19 = vpack.c.bf16 %v87_v18, %v87_v18 }
  0x85   :  { %v96_v22 = vunpack.c.l.b16 %v92_v19 }
  0x8a   :  { %v89_v20 = vpop.f32.mrf.mxu0 }
  0x8b   :  { %v93_v21 = vpack.c.bf16 %v89_v20, %v89_v20  ;;  %v1279_v20 = vld [vmem:[%s1601_s3 + $0x108] sm:$0xff] }
  0x8c   :  { %578 = vmatpush.bf16.msrb.mxu2 %v1279_v20 }
  0x8d   :  { %v97_v23 = vunpack.c.l.b16 %v93_v21 }
  0x8f   :  { %v98_v24 = vpack.c.b16 %v97_v23, %v96_v22 }
  0x91   :  { %205 = vmatmul.bf16.vlgmr.msra.gmra.mxu1 %v98_v24 }
  0xa4   :  { %v220_v27 = vpop.f32.mrf.mxu2 }
  0xac   :  { %v222_v34 = vpop.f32.mrf.mxu2 }
 0x10e   :  { %v206_v28 = vpop.f32.mrf.mxu1 }
 0x10f   :  { %v207_v29 = vadd.f32 %v206_v28, %v100_v26  ;;  %v1288_v28 = vld [vmem:[%s1601_s3 + $0x150] sm:$0xff] }
 0x111   :  { %v221_v30 = vadd.f32 %v220_v27, %v207_v29  ;;  %v1278_v27 = vld [vmem:[%s1601_s3 + $0x100] sm:$0xff]  ;;  %v1287_v29 = vld [vmem:[%s1601_s3 + $0x148] sm:$0xff] }
 0x112   :  { %579 = vmatpush.bf16.msrb.mxu2 %v1278_v27 }
 0x113   :  { %v225_v32 = vmax.f32 %v221_v30, 0.0  ;;  %v1286_v30 = vld [vmem:[%s1601_s3 + $0x140] sm:$0xff] }
 0x115   :  { %v227_v36 = vpack.c.bf16 %v225_v32, %v225_v32  ;;  %v1300_v32 = vld [vmem:[%s1604_s4 + $0x30] sm:$0xff] }
 0x116   :  { %v208_v31 = vpop.f32.mrf.mxu1 }
 0x117   :  { %v209_v33 = vadd.f32 %v208_v31, %v100_v26  ;;  %v264_v39 = vunpack.c.l.b16 %v227_v36  ;;  %v1244_v26 = vld [vmem:[%s1603_s1] sm:$0xff]  ;;  %v1301_v31 = vld [vmem:[%s1604_s4 + $0x38] sm:$0xff]  ;;  %v1296_v36 = vld [vmem:[%s1604_s4 + $0x10] sm:$0xff] }
 0x119   :  { %v223_v35 = vadd.f32 %v222_v34, %v209_v33  ;;  %v1299_v33 = vld [vmem:[%s1604_s4 + $0x28] sm:$0xff]  ;;  %v1298_v34 = vld [vmem:[%s1604_s4 + $0x20] sm:$0xff] }
 0x11b   :  { %v226_v37 = vmax.f32 %v223_v35, 0.0  ;;  %v1297_v35 = vld [vmem:[%s1604_s4 + $0x18] sm:$0xff] }
 0x11d   :  { %v228_v38 = vpack.c.bf16 %v226_v37, %v226_v37 }
 0x11f   :  { %v265_v40 = vunpack.c.l.b16 %v228_v38 }
 0x121   :  { %v266_v42 = vpack.c.b16 %v265_v40, %v264_v39 }
 0x123   :  { %275 = vmatpush.bf16.msra.mxu3 %v266_v42 }
 0x126   :  { %949 = vmatmul.msk.bf16.vlgmr.msra.gmra.mxu3 %vm74_vm0, %v1362_v2  ;;  %v1293_v2 = vld [vmem:[%s1601_s3 + $0x178] sm:$0xff] }
 0x127   :  { %401 = vmatpush.bf16.msrb.mxu3 %v1277_v41  ;;  %585 = vmatpush.bf16.msra.mxu0 %v1293_v2  ;;  %v1295_v41 = vld [vmem:[%s1604_s4 + $0x8] sm:$0xff] }
 0x12b   :  { %402 = vmatpush.bf16.msrb.mxu3 %v1276_v44  ;;  %586 = vmatpush.bf16.msra.mxu0 %v1292_v4  ;;  %v1308_v44 = vld [vmem:[%s1604_s4 + $0x70] sm:$0xff] }
 0x12f   :  { %403 = vmatpush.bf16.msrb.mxu3 %v1275_v46  ;;  %587 = vmatpush.bf16.msra.mxu0 %v1291_v6  ;;  %v1306_v46 = vld [vmem:[%s1604_s4 + $0x60] sm:$0xff] }
 0x133   :  { %404 = vmatpush.bf16.msrb.mxu3 %v1274_v48  ;;  %588 = vmatpush.bf16.msra.mxu0 %v1290_v8  ;;  %v1304_v48 = vld [vmem:[%s1604_s4 + $0x50] sm:$0xff]  ;;  %v1310_v8 = vld [vmem:[%s1604_s4 + $0x80] sm:$0xff] }
 0x137   :  { %405 = vmatpush.bf16.msrb.mxu3 %v1273_v50  ;;  %589 = vmatpush.bf16.msra.mxu0 %v1289_v13 }
 0x13b   :  { %406 = vmatpush.bf16.msrb.mxu3 %v1272_v51  ;;  %590 = vmatpush.bf16.msra.mxu0 %v1288_v28 }
 0x13f   :  { %407 = vmatpush.bf16.msrb.mxu3 %v1271_v52  ;;  %591 = vmatpush.bf16.msra.mxu0 %v1287_v29 }
 0x143   :  { %408 = vmatpush.bf16.msrb.mxu3 %v1270_v53  ;;  %592 = vmatpush.bf16.msra.mxu0 %v1286_v30 }
 0x146   :  { %409 = vmatmul.bf16.vlgmr.msrb.gmra.mxu3 %v266_v42  ;;  %v1294_v42 = vld [vmem:[%s1604_s4] sm:$0xff] }
 0x147   :  { %664 = vmatpush.bf16.msra.mxu3 %v1301_v31 }
 0x14b   :  { %665 = vmatpush.bf16.msra.mxu3 %v1300_v32 }
 0x14f   :  { %666 = vmatpush.bf16.msra.mxu3 %v1299_v33 }
 0x153   :  { %667 = vmatpush.bf16.msra.mxu3 %v1298_v34 }
 0x157   :  { %668 = vmatpush.bf16.msra.mxu3 %v1297_v35 }
 0x15b   :  { %669 = vmatpush.bf16.msra.mxu3 %v1296_v36 }
 0x15f   :  { %670 = vmatpush.bf16.msra.mxu3 %v1295_v41 }
 0x163   :  { %671 = vmatpush.bf16.msra.mxu3 %v1294_v42 }
 0x1a9   :  { %v277_v58 = vpop.f32.mrf.mxu3 }
 0x1aa   :  { %v282_v59 = vpack.c.bf16 %v277_v58, %v277_v58  ;;  %v1302_v58 = vld [vmem:[%s1604_s4 + $0x40] sm:$0xff] }
 0x1ac   :  { %v286_v62 = vunpack.c.l.b16 %v282_v59  ;;  %v1317_v59 = vld [vmem:[%s1604_s4 + $0xb8] sm:$0xff] }
 0x1ad   :  { %826 = vmatpush.bf16.msra.mxu2 %v1317_v59 }
 0x1b1   :  { %v279_v60 = vpop.f32.mrf.mxu3 }
 0x1b2   :  { %v283_v61 = vpack.c.bf16 %v279_v60, %v279_v60  ;;  %v1316_v60 = vld [vmem:[%s1604_s4 + $0xb0] sm:$0xff] }
 0x1b3   :  { %827 = vmatpush.bf16.msra.mxu2 %v1316_v60 }
 0x1b4   :  { %v287_v63 = vunpack.c.l.b16 %v283_v61  ;;  %v1315_v61 = vld [vmem:[%s1604_s4 + $0xa8] sm:$0xff] }
 0x1b6   :  { %v288_v0 = vpack.c.b16 %v287_v63, %v286_v62  ;;  %v1314_v62 = vld [vmem:[%s1604_s4 + $0xa0] sm:$0xff]  ;;  %v1313_v63 = vld [vmem:[%s1604_s4 + $0x98] sm:$0xff] }
 0x1b7   :  { %828 = vmatpush.bf16.msra.mxu2 %v1315_v61 }
 0x1b8   :  { %395 = vmatmul.bf16.vlgmr.msrb.gmra.mxu0 %v288_v0  ;;  %v1312_v0 = vld [vmem:[%s1604_s4 + $0x90] sm:$0xff] }
 0x1bb   :  { %829 = vmatpush.bf16.msra.mxu2 %v1314_v62 }
 0x1bf   :  { %830 = vmatpush.bf16.msra.mxu2 %v1313_v63 }
 0x1c3   :  { %831 = vmatpush.bf16.msra.mxu2 %v1312_v0 }
 0x1c7   :  { %832 = vmatpush.bf16.msra.mxu2 %v1311_v7 }
 0x1c9   :  { %v410_v9 = vpop.f32.mrf.mxu3 }
 0x1cb   :  { %833 = vmatpush.bf16.msra.mxu2 %v1310_v8 }
 0x1d1   :  { %v412_v19 = vpop.f32.mrf.mxu3 }
 0x235   :  { %v396_v10 = vpop.f32.mrf.mxu0 }
 0x236   :  { %v397_v14 = vadd.f32 %v396_v10, %v290_v11 }
 0x238   :  { %v411_v17 = vadd.f32 %v410_v9, %v397_v14  ;;  %v696_v9 = vperm.slane %v1414_v25, 4 }
 0x23a   :  { %v415_v22 = vmax.f32 %v411_v17, 0.0 }
 0x23d   :  { %v398_v16 = vpop.f32.mrf.mxu0 }
 0x23e   :  { %v399_v18 = vadd.f32 %v398_v16, %v290_v11 }
 0x240   :  { %v413_v21 = vadd.f32 %v412_v19, %v399_v18 }
 0x242   :  { %v416_v23 = vmax.f32 %v413_v21, 0.0 }
 0x244   :  { %v417_v24 = vpack.c.bf16 %v416_v23, %v415_v22 }
 0x246   :  { %433 = vmatpush.bf16.msrb.mxu1 %v417_v24 }
 0x249   :  { %1018 = vmatmul.msk.bf16.vlgmr.msrb.gmra.mxu1 %vm74_vm0, %v1244_v26 }
 0x24a   :  { %745 = vmatpush.bf16.msra.mxu1 %v1309_v43 }
 0x24e   :  { %746 = vmatpush.bf16.msra.mxu1 %v1308_v44 }
 0x252   :  { %747 = vmatpush.bf16.msra.mxu1 %v1307_v45 }
 0x256   :  { %748 = vmatpush.bf16.msra.mxu1 %v1306_v46 }
 0x25a   :  { %749 = vmatpush.bf16.msra.mxu1 %v1305_v47 }
 0x25e   :  { %750 = vmatpush.bf16.msra.mxu1 %v1304_v48 }
 0x262   :  { %751 = vmatpush.bf16.msra.mxu1 %v1303_v57 }
 0x266   :  { %752 = vmatpush.bf16.msra.mxu1 %v1302_v58 }
 0x2c6   :  { %v435_v37 = vpop.f32.mrf.mxu1 }
 0x2c7   :  { %v440_v38 = vpack.c.bf16 %v435_v37, %v435_v37 }
 0x2c9   :  { %580 = vmatmul.bf16.vlgmr.msrb.gmra.mxu2 %v440_v38 }
 0x2ce   :  { %v437_v39 = vpop.f32.mrf.mxu1 }
 0x2cf   :  { %v441_v40 = vpack.c.bf16 %v437_v39, %v437_v39 }
 0x2d1   :  { %593 = vmatmul.bf16.vlgmr.msra.gmra.mxu0 %v441_v40 }
 0x34c   :  { %v581_v50 = vpop.f32.mrf.mxu2 }
 0x34d   :  { %v582_v51 = vadd.f32 %v581_v50, %v475_v49 }
 0x34e   :  { %v594_v52 = vpop.f32.mrf.mxu0 }
 0x34f   :  { %v595_v53 = vadd.f32 %v594_v52, %v582_v51 }
 0x351   :  { %v598_v54 = vpack.c.bf16 %v595_v53, %v595_v53 }
 0x353   :  { %672 = vmatmul.bf16.vlgmr.msra.gmra.mxu3 %v598_v54 }
 0x354   :  { %v583_v55 = vpop.f32.mrf.mxu2 }
 0x356   :  { %v596_v56 = vpop.f32.mrf.mxu0 }
 0x3d6   :  { %v673_v2 = vpop.f32.mrf.mxu3 }
 0x3d7   :  { %v674_v3 = vadd.f32 %v673_v2, %v615_v1 }
 0x3d9   :  { %v677_v4 = vmax.f32 %v674_v3, 0.0 }
 0x3db   :  { %v678_v5 = vpack.c.bf16 %v677_v4, %v677_v4 }
 0x3dd   :  { %753 = vmatmul.bf16.vlgmr.msra.gmra.mxu1 %v678_v5 }
 0x3de   :  { %v675_v6 = vpop.f32.mrf.mxu3 }
 0x45a   :  { %v754_v10 = vpop.f32.mrf.mxu1 }
 0x45b   :  { %v755_v11 = vadd.f32 %v754_v10, %v696_v9 }
 0x45d   :  { %v758_v12 = vmax.f32 %v755_v11, 0.0 }
 0x45f   :  { %v759_v13 = vpack.c.bf16 %v758_v12, %v758_v12 }
 0x461   :  { %834 = vmatmul.bf16.vlgmr.msra.gmra.mxu2 %v759_v13 }
 0x462   :  { %v756_v14 = vpop.f32.mrf.mxu1 }
 0x4e4   :  { %v835_v16 = vpop.f32.mrf.mxu2 }
 0x4e5   :  { %v836_v17 = vadd.f32 %v835_v16, %v777_v15 }
 0x4e7   :  { %839 = vst [vmem:[%s1605_s6] sm:$0xff] %v836_v17 }
 0x4ec   :  { %v837_v18 = vpop.f32.mrf.mxu2 }

</bundles_post_ra>
